<compile_context>
chip_gen: v6e
topology: v6e:2x2x1
jax: 0.10.0
libtpu: 0.0.40
codegen_flags: <defaults>
</compile_context>

<pallas_src>
import jax
import jax.numpy as jnp
from jax.experimental import pallas as pl
from jax.experimental.pallas import tpu as pltpu


def _make_gap_linear_kernel(t_hw: int, lane_preserving: bool):
    def kernel(x_ref, w_ref, b_ref, o_ref, acc_ref):
        # x_ref:   (TN, C, T_HW)   streamed tile of the flattened feature map
        # w_ref:   (C, K)          weight.T pre-scaled by 1/(H*W)
        # b_ref:   (1, K)
        # o_ref:   (TN, K)         output block (resident across the HW axis)
        # acc_ref: (TN, C[, 128])  f32 running spatial sum (persists across HW steps)
        s = pl.program_id(1)

        @pl.when(s == 0)
        def _init():
            acc_ref[...] = jnp.zeros_like(acc_ref)

        if lane_preserving:
            # Pure VPU adds per streamed step; the single cross-lane (XLU)
            # fold happens once per N block in the finalize branch below.
            for j in range(t_hw // 128):
                acc_ref[...] += x_ref[:, :, pl.ds(j * 128, 128)].astype(jnp.float32)
        else:
            acc_ref[...] += jnp.sum(x_ref[...].astype(jnp.float32), axis=-1)

        @pl.when(s == pl.num_programs(1) - 1)
        def _finalize():
            pooled = acc_ref[...]
            if lane_preserving:
                pooled = jnp.sum(pooled, axis=-1)
            # 1/(H*W) is folded into w_ref, so this is a pure matmul + bias.
            out = jnp.dot(pooled, w_ref[...], preferred_element_type=jnp.float32)
            o_ref[...] = out + b_ref[...]

    return kernel


def _vmem_budget():
    """Generation-aware VMEM sizing (v5e/v6e: 128 MiB physical, v7x: 64 MiB)."""
    try:
        cap = int(pltpu.get_tpu_info().vmem_capacity_bytes)
    except Exception:
        cap = 64 << 20                                  # conservative: assume v7x
    vmem_limit = min((cap * 3) // 4, 96 << 20)          # scoped limit, leave headroom
    x_buf_budget = min(vmem_limit // 4, 16 << 20)       # per x buffer (double-buffered)
    return vmem_limit, x_buf_budget


def _choose_tiles(n, c, hw, itemsize, x_buf_budget, target_block_bytes=2 << 20):
    """Pick (tn, t_hw).  Priorities:
       1. t_hw == HW (one contiguous DMA run per (n, c) row) whenever it fits.
       2. tn large enough that the per-step x block reaches ~target_block_bytes
          (amortizes per-step overhead), but keep >= 2 grid rows on the
          parallel N axis (v7x megacore) whenever N allows it.
    """
    # Legal tn values: multiple-of-8 divisors of N (output-block constraint),
    # falling back to full N when none exist.
    tn_cands = sorted(d for d in range(8, min(n, 128) + 1, 8) if n % d == 0) or [n]
    multi_row = [t for t in tn_cands if n // t >= 2]
    tn_pool = multi_row if multi_row else tn_cands       # keep parallel axis > 1 if possible

    # Legal t_hw values: lane-dense (multiple-of-128) divisors of HW, plus full HW.
    hw_cands = sorted(d for d in range(128, hw, 128) if hw % d == 0) + [hw]

    def block_bytes(tn, t_hw):
        return tn * c * t_hw * itemsize

    # Pass 1: fully contiguous per-n DMA (t_hw == HW) if it fits the budget.
    full_fit = [t for t in tn_pool if block_bytes(t, hw) <= x_buf_budget]
    if full_fit:
        big = [t for t in full_fit if block_bytes(t, hw) >= target_block_bytes]
        return (min(big) if big else max(full_fit)), hw

    # Pass 2: HW must be tiled; smallest tn, largest lane-dense t_hw that fits.
    tn = min(tn_pool)
    min_lane = 256 if itemsize < 4 else 128              # keep strided DMA rows >= 512 B
    fitting = [d for d in hw_cands[:-1]
               if d >= min_lane and block_bytes(tn, d) <= x_buf_budget]
    if fitting:
        return tn, max(fitting)
    fallback = [d for d in hw_cands[:-1] if d >= min_lane] or hw_cands
    return tn, min(fallback)


def baseline_forward(x_list, weight, bias, n_tile=None, hw_tile=None):
    """Matches Baseline.forward: GAP over (H, W) of the LAST feature map, then Linear.
    weight: (num_classes, C) torch-style Linear weight; bias: (num_classes,)."""
    x = x_list[-1]
    N, C, H, W = x.shape
    K = weight.shape[0]
    HW = H * W

    x_flat = x.reshape(N, C, HW)                          # keep native dtype; cast in-kernel
    # Fold the mean scale into the weight so the finalize is matmul + bias only.
    w_scaled = weight.T.astype(jnp.float32) * (1.0 / HW)  # (C, K)
    b2 = bias.reshape(1, K).astype(jnp.float32)

    itemsize = jnp.dtype(x_flat.dtype).itemsize
    vmem_limit, x_buf_budget = _vmem_budget()
    tn, t_hw = _choose_tiles(N, C, HW, itemsize, x_buf_budget)
    if n_tile is not None:
        tn = n_tile
    if hw_tile is not None:
        t_hw = hw_tile
    assert N % tn == 0 and HW % t_hw == 0, "tile sizes must divide (N, H*W)"
    assert tn % 8 == 0 or tn == N, "N tile must be a multiple of 8 or full N"
    assert t_hw % 128 == 0 or t_hw == HW, "HW tile must be a multiple of 128 or full H*W"

    # Lane-preserving (VPU-only) streamed accumulation when the tile is a
    # modest multiple of 128 lanes; otherwise per-step cross-lane reduce.
    lane_preserving = (t_hw % 128 == 0) and (t_hw // 128 <= 8)
    acc_shape = (tn, C, 128) if lane_preserving else (tn, C)

    grid = (N // tn, HW // t_hw)                          # reduction (HW) axis last

    cost = pl.CostEstimate(
        flops=int(N * C * HW + 2 * N * C * K + N * K),
        transcendentals=0,
        bytes_accessed=int(N * C * HW * itemsize + C * K * 4 + K * 4 + N * K * 4),
    )

    return pl.pallas_call(
        _make_gap_linear_kernel(t_hw, lane_preserving),
        out_shape=jax.ShapeDtypeStruct((N, K), jnp.float32),
        grid=grid,
        in_specs=[
            pl.BlockSpec((tn, C, t_hw), lambda n, s: (n, 0, s)),   # streamed x
            pl.BlockSpec((C, K), lambda n, s: (0, 0)),             # resident weight
            pl.BlockSpec((1, K), lambda n, s: (0, 0)),             # resident bias
        ],
        out_specs=pl.BlockSpec((tn, K), lambda n, s: (n, 0)),      # resident across HW axis
        scratch_shapes=[pltpu.VMEM(acc_shape, jnp.float32)],       # f32 pooled-sum accumulator
        compiler_params=pltpu.CompilerParams(
            dimension_semantics=("parallel", "arbitrary"),
            vmem_limit_bytes=int(vmem_limit),
        ),
        cost_estimate=cost,
    )(x_flat, w_scaled, b2)


if __name__ == "__main__":
    key = jax.random.PRNGKey(0)

    # Module config: Baseline(in_channels_list, num_classes); Linear uses in_channels_list[4].
    in_channels_list = [4, 8, 16, 24, 32]
    num_classes = 10
    C = in_channels_list[4]          # 32
    N, H, W = 2, 16, 16

    k_feats, k_w, k_b, k_big, k_odd = jax.random.split(key, 5)

    # Input is a list of feature maps; only the last one is consumed by forward().
    feat_keys = jax.random.split(k_feats, len(in_channels_list))
    x_list = [
        jax.random.normal(fk, (N, c, H, W), dtype=jnp.float32)
        for fk, c in zip(feat_keys, in_channels_list)
    ]

    # Deterministic Linear params (PyTorch-style uniform(-1/sqrt(fan_in), 1/sqrt(fan_in))).
    bound = 1.0 / (C ** 0.5)
    weight = jax.random.uniform(k_w, (num_classes, C), minval=-bound, maxval=bound,
                                dtype=jnp.float32)
    bias = jax.random.uniform(k_b, (num_classes,), minval=-bound, maxval=bound,
                              dtype=jnp.float32)

    # 1) Module-spec shapes (t_hw == H*W contiguous DMA, lane-preserving accumulation).
    out = jax.block_until_ready(baseline_forward(x_list, weight, bias))
    ref = jnp.mean(x_list[-1], axis=(2, 3)) @ weight.T + bias
    assert out.shape == (N, num_classes)
    assert jnp.allclose(out, ref, atol=1e-5, rtol=1e-5)

    # 2) Larger batch: exercises the multi-step HW reduction and >= 2 parallel
    #    grid rows on the N axis (v7x megacore sharding).
    xb = jax.random.normal(k_big, (16, C, 32, 32), dtype=jnp.float32)
    out2 = jax.block_until_ready(baseline_forward([xb], weight, bias, hw_tile=128))
    ref2 = jnp.mean(xb, axis=(2, 3)) @ weight.T + bias
    assert jnp.allclose(out2, ref2, atol=1e-4, rtol=1e-4)

    # 3) Non-lane-aligned spatial size (7x7): exercises the full-HW cross-lane
    #    reduce fallback path.
    xo = jax.random.normal(k_odd, (8, C, 7, 7), dtype=jnp.float32)
    out3 = jax.block_until_ready(baseline_forward([xo], weight, bias))
    ref3 = jnp.mean(xo, axis=(2, 3)) @ weight.T + bias
    assert jnp.allclose(out3, ref3, atol=1e-5, rtol=1e-5)

    print("KERNEL_OK")
</pallas_src>

<mosaic_0001>
module attributes {stable_mosaic.version = 11 : i64} {
  func.func @kernel(%arg0: i32, %arg1: i32, %arg2: memref<2x32x256xf32, #tpu.memory_space<vmem>>, %arg3: memref<32x10xf32, #tpu.memory_space<vmem>>, %arg4: memref<1x10xf32, #tpu.memory_space<vmem>>, %arg5: memref<2x10xf32, #tpu.memory_space<vmem>>, %arg6: memref<2x32x128xf32, #tpu.memory_space<vmem>>) attributes {dimension_semantics = [#tpu.dimension_semantics<parallel>, #tpu.dimension_semantics<arbitrary>], iteration_bounds = array<i64: 1, 1>, scalar_prefetch = 0 : i64, scratch_operands = 1 : i64, tpu.core_type = #tpu.core_type<tc>, window_params = [{transform_indices = @transform_0, window_bounds = array<i64: 2, 32, 256>}, {pipeline_mode = #tpu.pipeline_mode<synchronous>, transform_indices = @transform_1, window_bounds = array<i64: 32, 10>}, {pipeline_mode = #tpu.pipeline_mode<synchronous>, transform_indices = @transform_2, window_bounds = array<i64: 1, 10>}, {transform_indices = @transform_3, window_bounds = array<i64: 2, 10>}]} {
    %c0_i32 = arith.constant 0 : i32
    %0 = arith.cmpi eq, %arg1, %c0_i32 : i32
    %1 = arith.extui %0 : i1 to i32
    %c0_i32_0 = arith.constant 0 : i32
    %2 = arith.cmpi ne, %1, %c0_i32_0 : i32
    scf.if %2 {
      %cst = arith.constant 0.000000e+00 : f32
      %14 = vector.broadcast %cst : f32 to vector<2x32x128xf32>
      %c0_19 = arith.constant 0 : index
      %c0_20 = arith.constant 0 : index
      %c0_21 = arith.constant 0 : index
      %15 = vector.load %arg6[%c0_19, %c0_20, %c0_21] : memref<2x32x128xf32, #tpu.memory_space<vmem>>, vector<2x32x128xf32>
      tpu.vector_store %arg6[%c0_19, %c0_20, %c0_21], %14 {strides = array<i32>} : memref<2x32x128xf32, #tpu.memory_space<vmem>>, vector<2x32x128xf32>,
    } else {
    }
    %c0 = arith.constant 0 : index
    %c0_1 = arith.constant 0 : index
    %c0_2 = arith.constant 0 : index
    %3 = vector.load %arg6[%c0, %c0_1, %c0_2] : memref<2x32x128xf32, #tpu.memory_space<vmem>>, vector<2x32x128xf32>
    %c0_3 = arith.constant 0 : index
    %c0_4 = arith.constant 0 : index
    %c0_5 = arith.constant 0 : index
    %4 = vector.load %arg2[%c0_3, %c0_4, %c0_5] : memref<2x32x256xf32, #tpu.memory_space<vmem>>, vector<2x32x128xf32>
    %5 = arith.addf %3, %4 : vector<2x32x128xf32>
    %c0_6 = arith.constant 0 : index
    %c0_7 = arith.constant 0 : index
    %c0_8 = arith.constant 0 : index
    %6 = vector.load %arg6[%c0_6, %c0_7, %c0_8] : memref<2x32x128xf32, #tpu.memory_space<vmem>>, vector<2x32x128xf32>
    tpu.vector_store %arg6[%c0_6, %c0_7, %c0_8], %5 {strides = array<i32>} : memref<2x32x128xf32, #tpu.memory_space<vmem>>, vector<2x32x128xf32>,
    %c0_9 = arith.constant 0 : index
    %c0_10 = arith.constant 0 : index
    %c0_11 = arith.constant 0 : index
    %7 = vector.load %arg6[%c0_9, %c0_10, %c0_11] : memref<2x32x128xf32, #tpu.memory_space<vmem>>, vector<2x32x128xf32>
    %c0_12 = arith.constant 0 : index
    %c0_13 = arith.constant 0 : index
    %c128 = arith.constant 128 : index
    %8 = vector.load %arg2[%c0_12, %c0_13, %c128] : memref<2x32x256xf32, #tpu.memory_space<vmem>>, vector<2x32x128xf32>
    %9 = arith.addf %7, %8 : vector<2x32x128xf32>
    %c0_14 = arith.constant 0 : index
    %c0_15 = arith.constant 0 : index
    %c0_16 = arith.constant 0 : index
    %10 = vector.load %arg6[%c0_14, %c0_15, %c0_16] : memref<2x32x128xf32, #tpu.memory_space<vmem>>, vector<2x32x128xf32>
    tpu.vector_store %arg6[%c0_14, %c0_15, %c0_16], %9 {strides = array<i32>} : memref<2x32x128xf32, #tpu.memory_space<vmem>>, vector<2x32x128xf32>,
    %c0_i32_17 = arith.constant 0 : i32
    %11 = arith.cmpi eq, %arg1, %c0_i32_17 : i32
    %12 = arith.extui %11 : i1 to i32
    %c0_i32_18 = arith.constant 0 : i32
    %13 = arith.cmpi ne, %12, %c0_i32_18 : i32
    scf.if %13 {
      %c0_19 = arith.constant 0 : index
      %c0_20 = arith.constant 0 : index
      %c0_21 = arith.constant 0 : index
      %14 = vector.load %arg6[%c0_19, %c0_20, %c0_21] : memref<2x32x128xf32, #tpu.memory_space<vmem>>, vector<2x32x128xf32>
      %cst = arith.constant dense<0.000000e+00> : vector<2x32xf32>
      %15 = vector.multi_reduction <add>, %14, %cst [2] : vector<2x32x128xf32> to vector<2x32xf32>
      %c0_22 = arith.constant 0 : index
      %c0_23 = arith.constant 0 : index
      %16 = vector.load %arg3[%c0_22, %c0_23] : memref<32x10xf32, #tpu.memory_space<vmem>>, vector<32x10xf32>
      %cst_24 = arith.constant dense<0.000000e+00> : vector<2x10xf32>
      %17 = tpu.matmul %15, %16, %cst_24 {dimension_numbers = #tpu.dot_dimension_numbers<[1], [0], [0], [1], [0, 0, 1, 1], [], []>} : vector<2x32xf32>, vector<32x10xf32>, vector<2x10xf32> -> vector<2x10xf32>
      %c0_25 = arith.constant 0 : index
      %c0_26 = arith.constant 0 : index
      %18 = vector.load %arg4[%c0_25, %c0_26] : memref<1x10xf32, #tpu.memory_space<vmem>>, vector<1x10xf32>
      %19 = vector.broadcast %18 : vector<1x10xf32> to vector<2x10xf32>
      %20 = arith.addf %17, %19 : vector<2x10xf32>
      %c0_27 = arith.constant 0 : index
      %c0_28 = arith.constant 0 : index
      %21 = vector.load %arg5[%c0_27, %c0_28] : memref<2x10xf32, #tpu.memory_space<vmem>>, vector<2x10xf32>
      tpu.vector_store %arg5[%c0_27, %c0_28], %20 {strides = array<i32>} : memref<2x10xf32, #tpu.memory_space<vmem>>, vector<2x10xf32>,
    } else {
    }
    return
  }
  func.func @transform_0(%arg0: i32, %arg1: i32) -> (i32, i32, i32) {
    %c0_i32 = arith.constant 0 : i32
    %c0_i32_0 = arith.constant 0 : i32
    return %arg0, %c0_i32, %arg1 : i32, i32, i32
  }
  func.func @transform_1(%arg0: i32, %arg1: i32) -> (i32, i32) {
    %c0_i32 = arith.constant 0 : i32
    %c0_i32_0 = arith.constant 0 : i32
    %c0_i32_1 = arith.constant 0 : i32
    return %c0_i32, %c0_i32_0 : i32, i32
  }
  func.func @transform_2(%arg0: i32, %arg1: i32) -> (i32, i32) {
    %c0_i32 = arith.constant 0 : i32
    %c0_i32_0 = arith.constant 0 : i32
    %c0_i32_1 = arith.constant 0 : i32
    return %c0_i32, %c0_i32_0 : i32, i32
  }
  func.func @transform_3(%arg0: i32, %arg1: i32) -> (i32, i32) {
    %c0_i32 = arith.constant 0 : i32
    %c0_i32_0 = arith.constant 0 : i32
    return %arg0, %c0_i32 : i32, i32
  }
}

</mosaic_0001>

<bundles_post_ra>
// kernel: tpu_custom_call.1
= control target key start
LH: loop header
LB: loop body
LE: loop exit
PB: predicated region body
PF: predicated region fallthrough
CT: control target
= control target key end

     0   :  { %8 = vsyncpa [#allocation4], 0  ;;  %s404_s0 = inlined_call_operand.hbm [shape: f32[2,32,256], index: 0, kind: input, shape index: {}]   ;;  %s405_s1 = inlined_call_operand.vmem [shape: f32[32,10], index: 1, kind: input, shape index: {}]   ;;  %s406_s2 = inlined_call_operand.vmem [shape: f32[1,10], index: 2, kind: input, shape index: {}]   ;;  %s407_s3 = inlined_call_operand.hbm [shape: f32[2,10], index: 3, kind: output, shape index: {}]  }
   0x1   :  { %9 = vsyncpa [#allocation5], 0  ;;  %s357_s12 = smov [#allocation3]  }
   0x2   :  { %s15_s13 = sshll.u32 %s357_s12, 4  ;;  %s16_s13 = int_to_ptr.vmem [resolvable:$true] %s15_s13 }
   0x3   :  { %s321_s14 = scalar_lea.vmem %s16_s13, 2048  ;;  %p326_p1 = scmp.lt.s32.totalorder %s16_s13, %s16_s13 }
   0x4   :  { %p322_p0 = scmp.ne.s32.totalorder %s16_s13, %s321_s14  ;;  %p327_p2 = scmp.lt.s32.totalorder %s321_s14, %s321_s14 }
   0x6   :  { %p328_p3 = por %p327_p2, %p326_p1 }
   0x8   :  { %p329_p4 = pnand %p328_p3, %p322_p0 }
   0xa   :  { %332 = shalt.err (!%p329_p4)
}
   0xb   :  { %s358_s15 = smov 256   ;;  %s359_s16 = smov 16  }
   0xc   :  { %21 = dma.hbm_to_vmem [thread:$0]  %s404_s0, 2048, %s16_s13, [#allocation4], %s358_s15, %s358_s15, %s359_s16  }
   0xd   :  { %353 = dma.done.wait [#allocation4], 2048  }
   0xe   :  { %354 = vsyncadd [#allocation4], 4294965248  ;;  %v53_v0 = vld [vmem:[#allocation3 + $0x40] sm:$0xff]  ;;  %v85_v1 = vld [vmem:[#allocation3 + $0x48] sm:$0xff]  ;;  %v360_v24 = vmov 0.0   ;;  %vm361_vm0 = vmmov 0   ;;  %v151_v29 = vlaneseq }
   0xf   :  { %v49_v2 = vld [vmem:[#allocation3] sm:$0xff]  ;;  %v93_v3 = vadd.f32 %v85_v1, %v53_v0  ;;  %v81_v4 = vld [vmem:[#allocation3 + $0x8] sm:$0xff]  ;;  %v54_v5 = vld [vmem:[#allocation3 + $0x50] sm:$0xff]  ;;  %296 = vmatprep.subr.mxu0 %v360_v24  ;;  %304 = vmatprep.mubr.msk.f32.mxu0 %vm361_vm0, %v360_v24  ;;  %vm162_vm1 = vcmask 130112   ;;  %vm169_vm2 = vcmask 195712   ;;  %vm176_vm3 = vcmask 261312  }
  0x10   :  { %v86_v6 = vld [vmem:[#allocation3 + $0x58] sm:$0xff]  ;;  %v89_v7 = vadd.f32 %v81_v4, %v49_v2  ;;  %v50_v8 = vld [vmem:[#allocation3 + $0x10] sm:$0xff]  ;;  %v55_v12 = vld [vmem:[#allocation3 + $0x60] sm:$0xff]  ;;  %v152_v30 = vand.u32 127, %v151_v29  ;;  %v154_v35 = vshrl.u32 %v151_v29, 7  ;;  %vm197_vm4 = vcmask 1041409  }
  0x11   :  { %v82_v9 = vld [vmem:[#allocation3 + $0x18] sm:$0xff]  ;;  %124 = vadd.xlane.f32.xlu1 %v93_v3  ;;  %v94_v10 = vadd.f32 %v86_v6, %v54_v5  ;;  %v87_v13 = vld [vmem:[#allocation3 + $0x68] sm:$0xff]  ;;  %v51_v14 = vld [vmem:[#allocation3 + $0x20] sm:$0xff]  ;;  %vm199_vm5 = vcmask 261120   ;;  %s362_s27 = smov [#allocation6]   ;;  %vm272_vm6 = vcmask 74752  }
  0x12   :  { %116 = vadd.xlane.f32.xlu0 %v89_v7  ;;  %v90_v11 = vadd.f32 %v82_v9, %v50_v8  ;;  %v83_v15 = vld [vmem:[#allocation3 + $0x28] sm:$0xff]  ;;  %v95_v16 = vadd.f32 %v87_v13, %v55_v12  ;;  %v56_v18 = vld [vmem:[#allocation3 + $0x70] sm:$0xff]  ;;  %v88_v19 = vld [vmem:[#allocation3 + $0x78] sm:$0xff]  ;;  %v157_v33 = vadd.s32 4294967288, %v152_v30  ;;  %v164_v34 = vadd.s32 4294967280, %v152_v30  ;;  %s280_s28 = sshll.u32 %s362_s27, 4  ;;  %s281_s28 = int_to_ptr.vmem [resolvable:$true] %s280_s28 }
  0x13   :  { %v91_v17 = vadd.f32 %v83_v15, %v51_v14  ;;  %v52_v20 = vld [vmem:[#allocation3 + $0x30] sm:$0xff]  ;;  %v84_v21 = vld [vmem:[#allocation3 + $0x38] sm:$0xff]  ;;  %v96_v22 = vadd.f32 %v88_v19, %v56_v18  ;;  %v133_v27 = vld [vmem:[%s405_s1 + $0x8] sm:$0xff]  ;;  %v171_v39 = vadd.s32 4294967272, %v152_v30  ;;  %v155_v41 = vsub.s32 %v152_v30, %v154_v35  ;;  %s333_s29 = scalar_lea.vmem %s281_s28, 32  ;;  %p338_p6 = scmp.lt.s32.totalorder %s281_s28, %s281_s28 }
  0x14   :  { %v92_v23 = vadd.f32 %v84_v21, %v52_v20  ;;  %v135_v25 = vld [vmem:[%s405_s1 + $0x18] sm:$0xff]  ;;  %v134_v26 = vld [vmem:[%s405_s1 + $0x10] sm:$0xff]  ;;  %v132_v28 = vld [vmem:[%s405_s1] sm:$0xff]  ;;  %v160_v37 = vsub.s32 %v157_v33, %v154_v35  ;;  %v167_v40 = vsub.s32 %v164_v34, %v154_v35  ;;  %p334_p5 = scmp.ne.s32.totalorder %s281_s28, %s333_s29  ;;  %p339_p7 = scmp.lt.s32.totalorder %s333_s29, %s333_s29 }
  0x15   :  { %126 = vadd.xlane.f32.xlu1 %v94_v10  ;;  %297 = vmatpush3.msra.mxu0 %v135_v25  ;;  %v174_v45 = vsub.s32 %v171_v39, %v154_v35  ;;  %v289_v62 = vld [vmem:[%s406_s2] ss:$0 sm:$0xff] }
  0x16   :  { %118 = vadd.xlane.f32.xlu0 %v90_v11  ;;  %298 = vmatprep.subr.mxu0 %v360_v24  ;;  %p340_p8 = por %p339_p7, %p338_p6 }
  0x17   :  { %299 = vmatpush3.msra.mxu0 %v134_v26 }
  0x18   :  { %300 = vmatprep.subr.mxu0 %v360_v24  ;;  %p341_p9 = pnand %p340_p8, %p334_p5 }
  0x19   :  { %128 = vadd.xlane.f32.xlu1 %v95_v16  ;;  %301 = vmatpush3.msra.mxu0 %v133_v27 }
  0x1a   :  { %120 = vadd.xlane.f32.xlu0 %v91_v17  ;;  %302 = vmatprep.subr.mxu0 %v360_v24 }
  0x1b   :  { %303 = vmatpush3.msra.mxu0 %v132_v28 }
  0x1d   :  { %130 = vadd.xlane.f32.xlu1 %v96_v22 }
  0x1e   :  { %122 = vadd.xlane.f32.xlu0 %v92_v23 }
  0x9a   :  { %v125_v31 = vpop.xlane.xlu1 %124 }
  0x9b   :  { %v117_v32 = vpop.xlane.xlu0 %116  ;;  %v181_v48 = vrot.slane %v125_v31, %v155_v41 }
  0x9c   :  { %v156_v50 = vrot.slane %v117_v32, %v155_v41 }
  0x9e   :  { %v127_v36 = vpop.xlane.xlu1 %126 }
  0x9f   :  { %v119_v38 = vpop.xlane.xlu0 %118  ;;  %v185_v43 = vrot.slane %v127_v36, %v160_v37 }
  0xa0   :  { %v161_v46 = vrot.slane %v119_v38, %v160_v37 }
  0xa1   :  { %v186_v52 = vsel %vm162_vm1, %v185_v43, %v181_v48 }
  0xa2   :  { %v129_v42 = vpop.xlane.xlu1 %128  ;;  %v163_v55 = vsel %vm162_vm1, %v161_v46, %v156_v50 }
  0xa3   :  { %v121_v44 = vpop.xlane.xlu0 %120  ;;  %v190_v47 = vrot.slane %v129_v42, %v167_v40 }
  0xa4   :  { %v168_v49 = vrot.slane %v121_v44, %v167_v40 }
  0xa5   :  { %v191_v56 = vsel %vm169_vm2, %v190_v47, %v186_v52 }
  0xa6   :  { %v131_v51 = vpop.xlane.xlu1 %130  ;;  %v170_v58 = vsel %vm169_vm2, %v168_v49, %v163_v55 }
  0xa7   :  { %v195_v53 = vrot.slane %v131_v51, %v174_v45  ;;  %v123_v54 = vpop.xlane.xlu0 %122 }
  0xa8   :  { %v175_v57 = vrot.slane %v123_v54, %v174_v45 }
  0xa9   :  { %v196_v59 = vsel %vm176_vm3, %v195_v53, %v191_v56 }
  0xaa   :  { %v177_v60 = vsel %vm176_vm3, %v175_v57, %v170_v58 }
  0xab   :  { %v198_v61 = vsel %vm197_vm4, %v196_v59, %v177_v60 }
  0xac   :  { %305 = vmatmul.mubr.msk.f32.vlgmr.msra.gmra.mxu0 %vm199_vm5, %v198_v61 }
 0x16c   :  { %v268_v63 = vpop.f32.mrf.mxu0 }
 0x16d   :  { %v269_v0 = vadd.f32 %v289_v62, %v268_v63 }
 0x16e   :  { %v306_v1 = vpop.f32.mrf.mxu0 }
 0x16f   :  { %273 = vst.msk [vmem:[#allocation6] sm:$0x3] %vm272_vm6, %v269_v0 }
 0x170   :  { %344 = shalt.err (!%p341_p9)
}
 0x171   :  { %283 = dma.vmem_to_hbm [thread:$0]  %s281_s28, 32, %s407_s3, [#allocation5]  }
 0x172   :  { %355 = dma.done.wait [#allocation5], 32  }
 0x173   :  { %356 = vsyncadd [#allocation5], 4294967264 }
 0x174   :  { %287 = vsyncpa [#allocation4], 1 }
 0x175   :  { %288 = vsyncpa [#allocation5], 1 }

</bundles_post_ra>
